<compile_context>
chip_gen: v7x
topology: tpu7x:2x2x1
jax: 0.10.0
libtpu: 0.0.40
codegen_flags: <defaults>
</compile_context>

<pallas_src>
import functools
import math

import numpy as np
import jax
import jax.numpy as jnp
from jax.experimental import pallas as pl
from jax.experimental.pallas import tpu as pltpu


# ----------------------------------------------------------------------------- #
# Tile picking helper: largest divisor of `total` that is a multiple of `multiple`,
# <= max_tile, preferring tiles that leave >= min_grid grid steps (keeps both v7x
# TensorCores busy).  Falls back to a single full-extent block.
# ----------------------------------------------------------------------------- #
def _pick_tile(total, max_tile, multiple=1, min_grid=4):
    max_tile = min(max_tile, total)
    best = None
    best_pref = None
    d = multiple
    while d <= max_tile:
        if total % d == 0:
            best = d
            if total // d >= min_grid:
                best_pref = d
        d += multiple
    if best_pref is not None:
        return best_pref
    if best is not None:
        return best
    return total


# ----------------------------------------------------------------------------- #
# Kernel 1: fused group-wise correlation (MXU) + group-mix regularizer stand-in.
# One grid step handles tbh (b, h) pixel-rows x all G groups.
# ----------------------------------------------------------------------------- #
def _fused_corr_mix_kernel(mix_ref, bias_ref, f1_ref, f2_ref, feat_ref, geo_ref,
                           *, num_groups, tbh, inv_sqrt_c):
    # f1_ref: (TBG, W1, Cg), f2_ref: (TBG, Cg, W2) with TBG = tbh * G (group fastest)
    # mix_ref: (G, G) in SMEM, bias_ref: (G,) in SMEM
    G = num_groups
    a = f1_ref[...]
    b = f2_ref[...]
    corr = jnp.einsum("twc,tcv->twv", a, b,
                      preferred_element_type=jnp.float32) * inv_sqrt_c
    feat_ref[...] = corr                                        # (TBG, W1, W2)

    tbg, w1, w2 = corr.shape
    corr4 = corr.reshape(tbh, G, w1, w2)                        # split leading dim (free)
    # TODO(synk): regularizer_3d is an unspecified external nn.Module (3D hourglass);
    #             replaced by a deterministic 1x1x1 group-mixing conv; `features` unused.
    parts = []
    for g in range(G):
        acc = corr4[:, 0] * mix_ref[g, 0]
        for k in range(1, G):
            acc = acc + corr4[:, k] * mix_ref[g, k]
        parts.append(acc + bias_ref[g])
    geo = jnp.stack(parts, axis=1)                              # (tbh, G, W1, W2)
    geo_ref[...] = geo.reshape(tbg, w1, w2)


def build_fused_cost_volumes(fmap1, fmap2, reg_mix, reg_bias, num_groups,
                             max_block_bytes=8 << 20):
    B, C, H, W = fmap1.shape
    G = num_groups
    Cg = num_groups          # torch.split(fmap, num_groups, dim=1): chunks of size num_groups
    assert C >= G * Cg, "need at least num_groups**2 channels"

    f1 = fmap1[:, :G * Cg].reshape(B, G, Cg, H, W).astype(jnp.float32)
    f2 = fmap2[:, :G * Cg].reshape(B, G, Cg, H, W).astype(jnp.float32)
    # pixel-major (B, H, G) row order so the rest of the pipeline never transposes
    # the cost volume again (only free reshapes follow).
    f1 = jnp.transpose(f1, (0, 3, 1, 4, 2)).reshape(B * H * G, W, Cg)   # (P3, W1, Cg)
    f2 = jnp.transpose(f2, (0, 3, 1, 2, 4)).reshape(B * H * G, Cg, W)   # (P3, Cg, W2)

    P3 = B * H * G
    # VMEM budget per pipeline stage (inputs + both outputs), x2 for double buffering.
    row_bytes = 4 * (2 * W * Cg + 2 * W * W)
    max_rows = max(G, int(max_block_bytes // (2 * row_bytes)))
    TBG = _pick_tile(P3, max_rows, multiple=G, min_grid=4)

    kernel = functools.partial(_fused_corr_mix_kernel, num_groups=G,
                               tbh=TBG // G, inv_sqrt_c=1.0 / math.sqrt(Cg))
    feat, geo = pl.pallas_call(
        kernel,
        out_shape=(jax.ShapeDtypeStruct((P3, W, W), jnp.float32),
                   jax.ShapeDtypeStruct((P3, W, W), jnp.float32)),
        grid=(P3 // TBG,),
        in_specs=[pl.BlockSpec(memory_space=pltpu.MemorySpace.SMEM),     # mix  (G, G)
                  pl.BlockSpec(memory_space=pltpu.MemorySpace.SMEM),     # bias (G,)
                  pl.BlockSpec((TBG, W, Cg), lambda i: (i, 0, 0)),
                  pl.BlockSpec((TBG, Cg, W), lambda i: (i, 0, 0))],
        out_specs=(pl.BlockSpec((TBG, W, W), lambda i: (i, 0, 0)),
                   pl.BlockSpec((TBG, W, W), lambda i: (i, 0, 0))),
        compiler_params=pltpu.CompilerParams(dimension_semantics=("parallel",)),
    )(reg_mix.astype(jnp.float32), reg_bias.astype(jnp.float32), f1, f2)

    # flattened pyramids: rows ordered (B, H, G, W1), columns W2 (free reshapes)
    return feat.reshape(B * H * G * W, W), geo.reshape(B * H * G * W, W)


# ----------------------------------------------------------------------------- #
# Kernel 2: fused feat + geo 1D linear sampling (zero padding), one wide store.
# Zero-padded linear interpolation == hat-weighted reduction over the disparity axis.
# ----------------------------------------------------------------------------- #
def _sample_kernel(coord_ref, feat_ref, geo_ref, out_ref, *, inv_scale, radius):
    TP, Wl = feat_ref.shape
    D = 2 * radius + 1
    c = coord_ref[...] * inv_scale                                  # (TP, 1)
    w_idx = jax.lax.broadcasted_iota(jnp.float32, (TP, Wl), 1)
    base = c - w_idx                                                # (TP, Wl)
    feat = feat_ref[...]
    geo = geo_ref[...]
    cols_f, cols_g = [], []
    for d in range(D):
        wgt = jnp.maximum(0.0, 1.0 - jnp.abs(base + float(d - radius)))
        cols_f.append(jnp.sum(feat * wgt, axis=-1, keepdims=True))
        cols_g.append(jnp.sum(geo * wgt, axis=-1, keepdims=True))
    # single (TP, 2D) store per block: feat columns first, then geo columns
    out_ref[...] = jnp.concatenate(cols_f + cols_g, axis=1)


def sample_level_pallas(coords_col, feat_cv, geo_cv, level, radius, max_tp=512):
    P, Wl = feat_cv.shape
    D = 2 * radius + 1
    TP = _pick_tile(P, max_tp, multiple=8, min_grid=4)
    kernel = functools.partial(_sample_kernel,
                               inv_scale=1.0 / float(2 ** level), radius=radius)
    return pl.pallas_call(
        kernel,
        out_shape=jax.ShapeDtypeStruct((P, 2 * D), jnp.float32),
        grid=(P // TP,),
        in_specs=[pl.BlockSpec((TP, 1), lambda i: (i, 0)),
                  pl.BlockSpec((TP, Wl), lambda i: (i, 0)),
                  pl.BlockSpec((TP, Wl), lambda i: (i, 0))],
        out_specs=pl.BlockSpec((TP, 2 * D), lambda i: (i, 0)),
        compiler_params=pltpu.CompilerParams(dimension_semantics=("parallel",)),
    )(coords_col, feat_cv, geo_cv)


def _avg_pool_cols(x):
    # F.avg_pool1d(x, 2): floor division on odd lengths (tail dropped).
    P, L = x.shape
    L2 = (L // 2) * 2
    return x[:, :L2].reshape(P, L2 // 2, 2).mean(axis=2)


# ----------------------------------------------------------------------------- #
# Module equivalent
# ----------------------------------------------------------------------------- #
class GeometryAwareCostVolumePallas:
    def __init__(self, fmap1, fmap2, features, reg_mix, reg_bias,
                 num_levels=4, radius=4, num_groups=8):
        # `features` unused by the stand-in regularizer (see TODO in kernel 1).
        self.num_groups = num_groups
        self.num_levels = num_levels
        self.radius = radius
        B, C, H, W = fmap1.shape
        self.B, self.H, self.W = B, H, W

        feat_flat, geo_flat = build_fused_cost_volumes(
            fmap1, fmap2, reg_mix, reg_bias, num_groups)

        self.feat_corr_cv = [feat_flat]
        self.geo_aware_cv = [geo_flat]
        for _ in range(num_levels):
            feat_flat = _avg_pool_cols(feat_flat)
            geo_flat = _avg_pool_cols(geo_flat)
            self.feat_corr_cv.append(feat_flat)
            self.geo_aware_cv.append(geo_flat)

    def __call__(self, coords):
        # coords: (B, 1, H, W) NCHW float disparity coordinates
        B, _, H, W = coords.shape
        G, r, L = self.num_groups, self.radius, self.num_levels
        D = 2 * r + 1
        c = coords[:, 0]                                            # (B, H, W)
        c = jnp.broadcast_to(c[:, :, None, :], (B, H, G, W))
        c = c.reshape(B * H * G * W, 1).astype(jnp.float32)

        per_level = [sample_level_pallas(c, self.feat_corr_cv[i],
                                         self.geo_aware_cv[i], i, r)
                     for i in range(L)]
        out = jnp.stack(per_level, axis=0)                          # (L, P, 2D)
        out = out.reshape(L, B, H, G, W, 2, D)
        # single transpose straight into NCHW channel order ((lvl, src, g, d) major->minor)
        out = jnp.transpose(out, (1, 0, 5, 3, 6, 2, 4))             # (B, L, 2, G, D, H, W)
        return out.reshape(B, L * 2 * G * D, H, W).astype(jnp.float32)


# ----------------------------------------------------------------------------- #
# Pure-JAX reference (same semantics, same stand-in regularizer, gather-based sampler)
# ----------------------------------------------------------------------------- #
def reference_forward(fmap1, fmap2, reg_mix, reg_bias, coords,
                      num_levels, radius, num_groups):
    B, C, H, W = fmap1.shape
    G = Cg = num_groups
    f1 = fmap1[:, :G * Cg].reshape(B, G, Cg, H, W)
    f2 = fmap2[:, :G * Cg].reshape(B, G, Cg, H, W)
    cv = jnp.einsum('bgchw,bgchv->bghwv', f1, f2) / np.sqrt(Cg)     # (B,G,H,W1,W2)

    geo = (cv[:, None] * reg_mix[None, :, :, None, None, None]).sum(axis=2) \
        + reg_bias[None, :, None, None, None]                       # (B,G,H,W1,W2)

    feat_flat = cv.reshape(B * G * H * W, W)
    geo_flat = geo.reshape(B * G * H * W, W)
    feat_pyr, geo_pyr = [feat_flat], [geo_flat]
    for _ in range(num_levels):
        feat_flat = _avg_pool_cols(feat_flat)
        geo_flat = _avg_pool_cols(geo_flat)
        feat_pyr.append(feat_flat)
        geo_pyr.append(geo_flat)

    D = 2 * radius + 1
    c = jnp.broadcast_to(coords[:, 0][:, None], (B, G, H, W)).reshape(B * G * H * W, 1)
    dx = jnp.arange(-radius, radius + 1, dtype=jnp.float32).reshape(1, D)
    outs = []
    for i in range(num_levels):
        cl = c / (2.0 ** i) + dx                                     # (P, D)
        for pyr in (feat_pyr, geo_pyr):
            vals = pyr[i]
            Wl = vals.shape[1]
            x0 = jnp.floor(cl)
            frac = cl - x0

            def gather(v, idx):
                ii = idx.astype(jnp.int32)
                valid = (ii >= 0) & (ii < Wl)
                g = jnp.take_along_axis(v, jnp.clip(ii, 0, Wl - 1), axis=1)
                return jnp.where(valid, g, 0.0)

            s = (1.0 - frac) * gather(vals, x0) + frac * gather(vals, x0 + 1)
            s = jnp.transpose(s.reshape(B, G, H, W, D), (0, 2, 3, 1, 4)).reshape(B, H, W, G * D)
            outs.append(s)
    out = jnp.concatenate(outs, axis=-1)
    return jnp.transpose(out, (0, 3, 1, 2)).astype(jnp.float32)


# ----------------------------------------------------------------------------- #
if __name__ == "__main__":
    B, H, W = 2, 8, 16
    num_groups = 4
    num_levels = 4
    radius = 4
    C = num_groups * num_groups                     # module uses first G*G channels

    key = jax.random.PRNGKey(0)
    k1, k2, k3, k4, k5 = jax.random.split(key, 5)
    fmap1 = jax.random.normal(k1, (B, C, H, W), dtype=jnp.float32)
    fmap2 = jax.random.normal(k2, (B, C, H, W), dtype=jnp.float32)
    coords = jax.random.uniform(k3, (B, 1, H, W), dtype=jnp.float32,
                                minval=0.0, maxval=float(W - 1))
    reg_mix = (jnp.eye(num_groups, dtype=jnp.float32)
               + 0.05 * jax.random.normal(k4, (num_groups, num_groups), dtype=jnp.float32))
    reg_bias = 0.1 * jax.random.normal(k5, (num_groups,), dtype=jnp.float32)
    features = []   # unused by the stand-in regularizer

    module = GeometryAwareCostVolumePallas(fmap1, fmap2, features, reg_mix, reg_bias,
                                           num_levels=num_levels, radius=radius,
                                           num_groups=num_groups)
    out = module(coords)
    out = jax.block_until_ready(out)

    ref = reference_forward(fmap1, fmap2, reg_mix, reg_bias, coords,
                            num_levels, radius, num_groups)
    expected_channels = num_levels * 2 * num_groups * (2 * radius + 1)
    assert out.shape == (B, expected_channels, H, W), out.shape
    np.testing.assert_allclose(np.asarray(out), np.asarray(ref), rtol=1e-3, atol=1e-3)
    print("KERNEL_OK")
</pallas_src>

<mosaic_0001>
module attributes {stable_mosaic.version = 11 : i64} {
  func.func @_fused_corr_mix_kernel(%arg0: i32, %arg1: memref<4x4xf32, #tpu.memory_space<smem>>, %arg2: memref<4xf32, #tpu.memory_space<smem>>, %arg3: memref<16x16x4xf32, #tpu.memory_space<vmem>>, %arg4: memref<16x4x16xf32, #tpu.memory_space<vmem>>, %arg5: memref<16x16x16xf32, #tpu.memory_space<vmem>>, %arg6: memref<16x16x16xf32, #tpu.memory_space<vmem>>) attributes {dimension_semantics = [#tpu.dimension_semantics<parallel>], iteration_bounds = array<i64: 4>, scalar_prefetch = 0 : i64, scratch_operands = 0 : i64, tpu.core_type = #tpu.core_type<tc>, window_params = [{transform_indices = @transform_0, window_bounds = array<i64: 4, 4>}, {transform_indices = @transform_1, window_bounds = array<i64: 4>}, {transform_indices = @transform_2, window_bounds = array<i64: 16, 16, 4>}, {transform_indices = @transform_3, window_bounds = array<i64: 16, 4, 16>}, {transform_indices = @transform_4, window_bounds = array<i64: 16, 16, 16>}, {transform_indices = @transform_5, window_bounds = array<i64: 16, 16, 16>}]} {
    %c0 = arith.constant 0 : index
    %c0_0 = arith.constant 0 : index
    %c0_1 = arith.constant 0 : index
    %0 = vector.load %arg3[%c0, %c0_0, %c0_1] : memref<16x16x4xf32, #tpu.memory_space<vmem>>, vector<16x16x4xf32>
    %c0_2 = arith.constant 0 : index
    %c0_3 = arith.constant 0 : index
    %c0_4 = arith.constant 0 : index
    %1 = vector.load %arg4[%c0_2, %c0_3, %c0_4] : memref<16x4x16xf32, #tpu.memory_space<vmem>>, vector<16x4x16xf32>
    "tpu.trace_start"() <{level = 10 : i32, message = "twc,tcv->twv"}> : () -> ()
    %cst = arith.constant dense<0.000000e+00> : vector<16x16x16xf32>
    %2 = tpu.matmul %0, %1, %cst {dimension_numbers = #tpu.dot_dimension_numbers<[2], [1], [1], [2], [0, 0, 0, 1, 1, 2], [0], [0]>} : vector<16x16x4xf32>, vector<16x4x16xf32>, vector<16x16x16xf32> -> vector<16x16x16xf32>
    "tpu.trace_stop"() : () -> ()
    %cst_5 = arith.constant 5.000000e-01 : f32
    %3 = vector.broadcast %cst_5 : f32 to vector<16x16x16xf32>
    %4 = arith.mulf %2, %3 : vector<16x16x16xf32>
    %c0_6 = arith.constant 0 : index
    %c0_7 = arith.constant 0 : index
    %c0_8 = arith.constant 0 : index
    %5 = vector.load %arg5[%c0_6, %c0_7, %c0_8] : memref<16x16x16xf32, #tpu.memory_space<vmem>>, vector<16x16x16xf32>
    tpu.vector_store %arg5[%c0_6, %c0_7, %c0_8], %4 {strides = array<i32>} : memref<16x16x16xf32, #tpu.memory_space<vmem>>, vector<16x16x16xf32>,
    %6 = vector.shape_cast %4 : vector<16x16x16xf32> to vector<4x4x16x16xf32>
    %7 = vector.extract_strided_slice %6 {offsets = [0, 0, 0, 0], sizes = [4, 1, 16, 16], strides = [1, 1, 1, 1]} : vector<4x4x16x16xf32> to vector<4x1x16x16xf32>
    %8 = vector.shape_cast %7 : vector<4x1x16x16xf32> to vector<4x16x16xf32>
    %c0_9 = arith.constant 0 : index
    %c0_10 = arith.constant 0 : index
    %9 = memref.load %arg1[%c0_9, %c0_10] : memref<4x4xf32, #tpu.memory_space<smem>>
    %10 = vector.broadcast %9 : f32 to vector<4x16x16xf32>
    %11 = arith.mulf %8, %10 : vector<4x16x16xf32>
    %12 = vector.extract_strided_slice %6 {offsets = [0, 1, 0, 0], sizes = [4, 1, 16, 16], strides = [1, 1, 1, 1]} : vector<4x4x16x16xf32> to vector<4x1x16x16xf32>
    %13 = vector.shape_cast %12 : vector<4x1x16x16xf32> to vector<4x16x16xf32>
    %c0_11 = arith.constant 0 : index
    %c1 = arith.constant 1 : index
    %14 = memref.load %arg1[%c0_11, %c1] : memref<4x4xf32, #tpu.memory_space<smem>>
    %15 = vector.broadcast %14 : f32 to vector<4x16x16xf32>
    %16 = arith.mulf %13, %15 : vector<4x16x16xf32>
    %17 = arith.addf %11, %16 : vector<4x16x16xf32>
    %18 = vector.extract_strided_slice %6 {offsets = [0, 2, 0, 0], sizes = [4, 1, 16, 16], strides = [1, 1, 1, 1]} : vector<4x4x16x16xf32> to vector<4x1x16x16xf32>
    %19 = vector.shape_cast %18 : vector<4x1x16x16xf32> to vector<4x16x16xf32>
    %c0_12 = arith.constant 0 : index
    %c2 = arith.constant 2 : index
    %20 = memref.load %arg1[%c0_12, %c2] : memref<4x4xf32, #tpu.memory_space<smem>>
    %21 = vector.broadcast %20 : f32 to vector<4x16x16xf32>
    %22 = arith.mulf %19, %21 : vector<4x16x16xf32>
    %23 = arith.addf %17, %22 : vector<4x16x16xf32>
    %24 = vector.extract_strided_slice %6 {offsets = [0, 3, 0, 0], sizes = [4, 1, 16, 16], strides = [1, 1, 1, 1]} : vector<4x4x16x16xf32> to vector<4x1x16x16xf32>
    %25 = vector.shape_cast %24 : vector<4x1x16x16xf32> to vector<4x16x16xf32>
    %c0_13 = arith.constant 0 : index
    %c3 = arith.constant 3 : index
    %26 = memref.load %arg1[%c0_13, %c3] : memref<4x4xf32, #tpu.memory_space<smem>>
    %27 = vector.broadcast %26 : f32 to vector<4x16x16xf32>
    %28 = arith.mulf %25, %27 : vector<4x16x16xf32>
    %29 = arith.addf %23, %28 : vector<4x16x16xf32>
    %c0_14 = arith.constant 0 : index
    %30 = memref.load %arg2[%c0_14] : memref<4xf32, #tpu.memory_space<smem>>
    %31 = vector.broadcast %30 : f32 to vector<4x16x16xf32>
    %32 = arith.addf %29, %31 : vector<4x16x16xf32>
    %33 = vector.extract_strided_slice %6 {offsets = [0, 0, 0, 0], sizes = [4, 1, 16, 16], strides = [1, 1, 1, 1]} : vector<4x4x16x16xf32> to vector<4x1x16x16xf32>
    %34 = vector.shape_cast %33 : vector<4x1x16x16xf32> to vector<4x16x16xf32>
    %c1_15 = arith.constant 1 : index
    %c0_16 = arith.constant 0 : index
    %35 = memref.load %arg1[%c1_15, %c0_16] : memref<4x4xf32, #tpu.memory_space<smem>>
    %36 = vector.broadcast %35 : f32 to vector<4x16x16xf32>
    %37 = arith.mulf %34, %36 : vector<4x16x16xf32>
    %38 = vector.extract_strided_slice %6 {offsets = [0, 1, 0, 0], sizes = [4, 1, 16, 16], strides = [1, 1, 1, 1]} : vector<4x4x16x16xf32> to vector<4x1x16x16xf32>
    %39 = vector.shape_cast %38 : vector<4x1x16x16xf32> to vector<4x16x16xf32>
    %c1_17 = arith.constant 1 : index
    %c1_18 = arith.constant 1 : index
    %40 = memref.load %arg1[%c1_17, %c1_18] : memref<4x4xf32, #tpu.memory_space<smem>>
    %41 = vector.broadcast %40 : f32 to vector<4x16x16xf32>
    %42 = arith.mulf %39, %41 : vector<4x16x16xf32>
    %43 = arith.addf %37, %42 : vector<4x16x16xf32>
    %44 = vector.extract_strided_slice %6 {offsets = [0, 2, 0, 0], sizes = [4, 1, 16, 16], strides = [1, 1, 1, 1]} : vector<4x4x16x16xf32> to vector<4x1x16x16xf32>
    %45 = vector.shape_cast %44 : vector<4x1x16x16xf32> to vector<4x16x16xf32>
    %c1_19 = arith.constant 1 : index
    %c2_20 = arith.constant 2 : index
    %46 = memref.load %arg1[%c1_19, %c2_20] : memref<4x4xf32, #tpu.memory_space<smem>>
    %47 = vector.broadcast %46 : f32 to vector<4x16x16xf32>
    %48 = arith.mulf %45, %47 : vector<4x16x16xf32>
    %49 = arith.addf %43, %48 : vector<4x16x16xf32>
    %50 = vector.extract_strided_slice %6 {offsets = [0, 3, 0, 0], sizes = [4, 1, 16, 16], strides = [1, 1, 1, 1]} : vector<4x4x16x16xf32> to vector<4x1x16x16xf32>
    %51 = vector.shape_cast %50 : vector<4x1x16x16xf32> to vector<4x16x16xf32>
    %c1_21 = arith.constant 1 : index
    %c3_22 = arith.constant 3 : index
    %52 = memref.load %arg1[%c1_21, %c3_22] : memref<4x4xf32, #tpu.memory_space<smem>>
    %53 = vector.broadcast %52 : f32 to vector<4x16x16xf32>
    %54 = arith.mulf %51, %53 : vector<4x16x16xf32>
    %55 = arith.addf %49, %54 : vector<4x16x16xf32>
    %c1_23 = arith.constant 1 : index
    %56 = memref.load %arg2[%c1_23] : memref<4xf32, #tpu.memory_space<smem>>
    %57 = vector.broadcast %56 : f32 to vector<4x16x16xf32>
    %58 = arith.addf %55, %57 : vector<4x16x16xf32>
    %59 = vector.extract_strided_slice %6 {offsets = [0, 0, 0, 0], sizes = [4, 1, 16, 16], strides = [1, 1, 1, 1]} : vector<4x4x16x16xf32> to vector<4x1x16x16xf32>
    %60 = vector.shape_cast %59 : vector<4x1x16x16xf32> to vector<4x16x16xf32>
    %c2_24 = arith.constant 2 : index
    %c0_25 = arith.constant 0 : index
    %61 = memref.load %arg1[%c2_24, %c0_25] : memref<4x4xf32, #tpu.memory_space<smem>>
    %62 = vector.broadcast %61 : f32 to vector<4x16x16xf32>
    %63 = arith.mulf %60, %62 : vector<4x16x16xf32>
    %64 = vector.extract_strided_slice %6 {offsets = [0, 1, 0, 0], sizes = [4, 1, 16, 16], strides = [1, 1, 1, 1]} : vector<4x4x16x16xf32> to vector<4x1x16x16xf32>
    %65 = vector.shape_cast %64 : vector<4x1x16x16xf32> to vector<4x16x16xf32>
    %c2_26 = arith.constant 2 : index
    %c1_27 = arith.constant 1 : index
    %66 = memref.load %arg1[%c2_26, %c1_27] : memref<4x4xf32, #tpu.memory_space<smem>>
    %67 = vector.broadcast %66 : f32 to vector<4x16x16xf32>
    %68 = arith.mulf %65, %67 : vector<4x16x16xf32>
    %69 = arith.addf %63, %68 : vector<4x16x16xf32>
    %70 = vector.extract_strided_slice %6 {offsets = [0, 2, 0, 0], sizes = [4, 1, 16, 16], strides = [1, 1, 1, 1]} : vector<4x4x16x16xf32> to vector<4x1x16x16xf32>
    %71 = vector.shape_cast %70 : vector<4x1x16x16xf32> to vector<4x16x16xf32>
    %c2_28 = arith.constant 2 : index
    %c2_29 = arith.constant 2 : index
    %72 = memref.load %arg1[%c2_28, %c2_29] : memref<4x4xf32, #tpu.memory_space<smem>>
    %73 = vector.broadcast %72 : f32 to vector<4x16x16xf32>
    %74 = arith.mulf %71, %73 : vector<4x16x16xf32>
    %75 = arith.addf %69, %74 : vector<4x16x16xf32>
    %76 = vector.extract_strided_slice %6 {offsets = [0, 3, 0, 0], sizes = [4, 1, 16, 16], strides = [1, 1, 1, 1]} : vector<4x4x16x16xf32> to vector<4x1x16x16xf32>
    %77 = vector.shape_cast %76 : vector<4x1x16x16xf32> to vector<4x16x16xf32>
    %c2_30 = arith.constant 2 : index
    %c3_31 = arith.constant 3 : index
    %78 = memref.load %arg1[%c2_30, %c3_31] : memref<4x4xf32, #tpu.memory_space<smem>>
    %79 = vector.broadcast %78 : f32 to vector<4x16x16xf32>
    %80 = arith.mulf %77, %79 : vector<4x16x16xf32>
    %81 = arith.addf %75, %80 : vector<4x16x16xf32>
    %c2_32 = arith.constant 2 : index
    %82 = memref.load %arg2[%c2_32] : memref<4xf32, #tpu.memory_space<smem>>
    %83 = vector.broadcast %82 : f32 to vector<4x16x16xf32>
    %84 = arith.addf %81, %83 : vector<4x16x16xf32>
    %85 = vector.extract_strided_slice %6 {offsets = [0, 0, 0, 0], sizes = [4, 1, 16, 16], strides = [1, 1, 1, 1]} : vector<4x4x16x16xf32> to vector<4x1x16x16xf32>
    %86 = vector.shape_cast %85 : vector<4x1x16x16xf32> to vector<4x16x16xf32>
    %c3_33 = arith.constant 3 : index
    %c0_34 = arith.constant 0 : index
    %87 = memref.load %arg1[%c3_33, %c0_34] : memref<4x4xf32, #tpu.memory_space<smem>>
    %88 = vector.broadcast %87 : f32 to vector<4x16x16xf32>
    %89 = arith.mulf %86, %88 : vector<4x16x16xf32>
    %90 = vector.extract_strided_slice %6 {offsets = [0, 1, 0, 0], sizes = [4, 1, 16, 16], strides = [1, 1, 1, 1]} : vector<4x4x16x16xf32> to vector<4x1x16x16xf32>
    %91 = vector.shape_cast %90 : vector<4x1x16x16xf32> to vector<4x16x16xf32>
    %c3_35 = arith.constant 3 : index
    %c1_36 = arith.constant 1 : index
    %92 = memref.load %arg1[%c3_35, %c1_36] : memref<4x4xf32, #tpu.memory_space<smem>>
    %93 = vector.broadcast %92 : f32 to vector<4x16x16xf32>
    %94 = arith.mulf %91, %93 : vector<4x16x16xf32>
    %95 = arith.addf %89, %94 : vector<4x16x16xf32>
    %96 = vector.extract_strided_slice %6 {offsets = [0, 2, 0, 0], sizes = [4, 1, 16, 16], strides = [1, 1, 1, 1]} : vector<4x4x16x16xf32> to vector<4x1x16x16xf32>
    %97 = vector.shape_cast %96 : vector<4x1x16x16xf32> to vector<4x16x16xf32>
    %c3_37 = arith.constant 3 : index
    %c2_38 = arith.constant 2 : index
    %98 = memref.load %arg1[%c3_37, %c2_38] : memref<4x4xf32, #tpu.memory_space<smem>>
    %99 = vector.broadcast %98 : f32 to vector<4x16x16xf32>
    %100 = arith.mulf %97, %99 : vector<4x16x16xf32>
    %101 = arith.addf %95, %100 : vector<4x16x16xf32>
    %102 = vector.extract_strided_slice %6 {offsets = [0, 3, 0, 0], sizes = [4, 1, 16, 16], strides = [1, 1, 1, 1]} : vector<4x4x16x16xf32> to vector<4x1x16x16xf32>
    %103 = vector.shape_cast %102 : vector<4x1x16x16xf32> to vector<4x16x16xf32>
    %c3_39 = arith.constant 3 : index
    %c3_40 = arith.constant 3 : index
    %104 = memref.load %arg1[%c3_39, %c3_40] : memref<4x4xf32, #tpu.memory_space<smem>>
    %105 = vector.broadcast %104 : f32 to vector<4x16x16xf32>
    %106 = arith.mulf %103, %105 : vector<4x16x16xf32>
    %107 = arith.addf %101, %106 : vector<4x16x16xf32>
    %c3_41 = arith.constant 3 : index
    %108 = memref.load %arg2[%c3_41] : memref<4xf32, #tpu.memory_space<smem>>
    %109 = vector.broadcast %108 : f32 to vector<4x16x16xf32>
    %110 = arith.addf %107, %109 : vector<4x16x16xf32>
    %111 = vector.shape_cast %32 : vector<4x16x16xf32> to vector<4x1x16x16xf32>
    %112 = vector.shape_cast %58 : vector<4x16x16xf32> to vector<4x1x16x16xf32>
    %113 = vector.shape_cast %84 : vector<4x16x16xf32> to vector<4x1x16x16xf32>
    %114 = vector.shape_cast %110 : vector<4x16x16xf32> to vector<4x1x16x16xf32>
    %115 = tpu.concatenate %111, %112, %113, %114 in 1 : vector<4x1x16x16xf32>, vector<4x1x16x16xf32>, vector<4x1x16x16xf32>, vector<4x1x16x16xf32> -> vector<4x4x16x16xf32>
    %116 = vector.shape_cast %115 : vector<4x4x16x16xf32> to vector<16x16x16xf32>
    %c0_42 = arith.constant 0 : index
    %c0_43 = arith.constant 0 : index
    %c0_44 = arith.constant 0 : index
    %117 = vector.load %arg6[%c0_42, %c0_43, %c0_44] : memref<16x16x16xf32, #tpu.memory_space<vmem>>, vector<16x16x16xf32>
    tpu.vector_store %arg6[%c0_42, %c0_43, %c0_44], %116 {strides = array<i32>} : memref<16x16x16xf32, #tpu.memory_space<vmem>>, vector<16x16x16xf32>,
    return
  }
  func.func @transform_0(%arg0: i32) -> (i32, i32) {
    %c0_i32 = arith.constant 0 : i32
    %c0_i32_0 = arith.constant 0 : i32
    %c0_i32_1 = arith.constant 0 : i32
    return %c0_i32, %c0_i32_0 : i32, i32
  }
  func.func @transform_1(%arg0: i32) -> i32 {
    %c0_i32 = arith.constant 0 : i32
    %c0_i32_0 = arith.constant 0 : i32
    return %c0_i32 : i32
  }
  func.func @transform_2(%arg0: i32) -> (i32, i32, i32) {
    %c0_i32 = arith.constant 0 : i32
    %c0_i32_0 = arith.constant 0 : i32
    %c0_i32_1 = arith.constant 0 : i32
    return %arg0, %c0_i32, %c0_i32_0 : i32, i32, i32
  }
  func.func @transform_3(%arg0: i32) -> (i32, i32, i32) {
    %c0_i32 = arith.constant 0 : i32
    %c0_i32_0 = arith.constant 0 : i32
    %c0_i32_1 = arith.constant 0 : i32
    return %arg0, %c0_i32, %c0_i32_0 : i32, i32, i32
  }
  func.func @transform_4(%arg0: i32) -> (i32, i32, i32) {
    %c0_i32 = arith.constant 0 : i32
    %c0_i32_0 = arith.constant 0 : i32
    %c0_i32_1 = arith.constant 0 : i32
    return %arg0, %c0_i32, %c0_i32_0 : i32, i32, i32
  }
  func.func @transform_5(%arg0: i32) -> (i32, i32, i32) {
    %c0_i32 = arith.constant 0 : i32
    %c0_i32_0 = arith.constant 0 : i32
    %c0_i32_1 = arith.constant 0 : i32
    return %arg0, %c0_i32, %c0_i32_0 : i32, i32, i32
  }
}

</mosaic_0001>

<bundles_post_ra>
// kernel: tpu_custom_call.1
= control target key start
LH: loop header
LB: loop body
LE: loop exit
PB: predicated region body
PF: predicated region fallthrough
CT: control target
= control target key end

     0   :  { %11 = vsyncpa [#allocation3], 0  ;;  %s3118_s0 = inlined_call_operand.vmem [shape: f32[4,4], index: 0, kind: input, shape index: {}]   ;;  %s3119_s1 = inlined_call_operand.vmem [shape: f32[4], index: 1, kind: input, shape index: {}]   ;;  %s3120_s2 = inlined_call_operand.vmem [shape: f32[64,16,4], index: 2, kind: input, shape index: {}]   ;;  %s3121_s3 = inlined_call_operand.vmem [shape: f32[64,4,16], index: 3, kind: input, shape index: {}]   ;;  %s3122_s4 = inlined_call_operand.vmem [shape: f32[64,16,16], index: 4, kind: output, shape index: {0}]   ;;  %s3123_s5 = inlined_call_operand.vmem [shape: f32[64,16,16], index: 5, kind: output, shape index: {1}]  }
   0x1   :  { %12 = vsyncpa [#allocation5], 0  ;;  %s2539_s18 = smov 0  }
   0x2 LB: > { %s2213_s19 = sadd.s32 4294967295, %s2505_s18   ;;  %p2215_p0 = scmp.ge.s32.totalorder %s2505_s18, 1  ;;  %s2505_s18 = sphi %s2539_s18, %s18_s18  }
   0x3   : > { %p169_p1 = scmp.lt.s32.totalorder %s2505_s18, 5  ;;  %s182_s22 = sshll.u32 %s3118_s0, 4  ;;  %s183_s22 = int_to_ptr.vmem [resolvable:$true] %s182_s22 }
   0x4   : > { %p2556_p3 = scmp.eq.s32.totalorder %s2213_s19, 0  ;;  %s193_s27 = sshll.u32 %s3119_s1, 4  ;;  %s194_s27 = int_to_ptr.vmem [resolvable:$true] %s193_s27 }
   0x5   : > { %p2550_p2 = pnand %p2215_p0, %p169_p1  ;;  %s2461_s29 = scalar_lea.vmem %s183_s22, 64 }
   0x6   : > { %s3128_s24 = scalar_select %p2556_p3, 1, 0 }
   0x7   : > { %s3127_s23 = scalar_select %p2550_p2, 1, 0 }
   0x8   : > { %p2440_p4 = pneg %p2550_p2  ;;  %p2462_p6 = scmp.ne.s32.totalorder %s183_s22, %s2461_s29 }
   0x9   : > { %p2469_p10 = scmp.lt.s32.totalorder %s183_s22, %s183_s22  ;;  %p2470_p11 = scmp.lt.s32.totalorder %s2461_s29, %s2461_s29 }
   0xa   : > { %p2567_p5 = pnand %p2556_p3, %p2440_p4 }
   0xb   : > { %p2471_p12 = por %p2470_p11, %p2469_p10 }
   0xc   : > { %p2463_p7 = pneg %p2567_p5 }
   0xe   : > { %p2464_p8 = pnand %p2463_p7, %p2462_p6 }
  0x10   : > { %p2465_p9 = pneg %p2464_p8 }
  0x12   : > { %p2472_p13 = pnand %p2471_p12, %p2465_p9 }
  0x14   : > { %2475 = shalt.err (!%p2472_p13)
}
  0x15   : > { %s2507_s30 = smov [#allocation2]   ;;  %s2476_s6 = scalar_lea.vmem %s194_s27, 16 }
  0x16   : > { %2443 = dma.vmem_to_smem (!%p2567_p5), %s183_s22, 64, %s2507_s30, [#allocation3]  }
  0x17   : > { %p2477_p0 = scmp.ne.s32.totalorder %s194_s27, %s2476_s6  ;;  %p2484_p3 = scmp.lt.s32.totalorder %s194_s27, %s194_s27 }
  0x18   : > { %p2485_p2 = scmp.lt.s32.totalorder %s2476_s6, %s2476_s6 }
  0x19   : > { %p2479_p1 = pnand %p2477_p0, %p2463_p7 }
  0x1a   : > { %p2486_p6 = por %p2485_p2, %p2484_p3 }
  0x1b   : > { %p2480_p4 = pneg %p2479_p1 }
  0x1d   : > { %p2487_p8 = pnand %p2486_p6, %p2480_p4 }
  0x1f   : > { %2490 = shalt.err (!%p2487_p8)
}
  0x20   : > { %s2508_s7 = smov [#allocation4]   ;;  %p3130_p9 = scmp.ne.s32.totalorder %s3127_s23, 0 }
  0x21   : > { %2446 = dma.vmem_to_smem (!%p2567_p5), %s194_s27, 16, %s2508_s7, [#allocation5]  }
  0x22   : > { %225 = sbr.rel (%p3130_p9) target bundleno = 350 (0x15e), region = 36 }
  0x29   : > { %p3131_p10 = scmp.ne.s32.totalorder %s3128_s24, 0 }
  0x2b   : > { %2496 = dma.done.wait (%p3131_p10), [#allocation3], 64  }
  0x2c   : > { %2498 = vsyncadd (%p3131_p10), [#allocation3], 4294967232 }
  0x2d   : > { %2500 = dma.done.wait (%p3131_p10), [#allocation5], 16  }
  0x2e   : > { %2502 = vsyncadd (%p3131_p10), [#allocation5], 4294967280 }
  0x2f   : > { %235 = sfence }
  0x30   : > { %s2222_s8 = sshll.u32 %s2213_s19, 4  ;;  %vm353_vm0 = vcmask 1043456   ;;  %vm346_vm1 = vcmask 31744   ;;  %s1757_s17 = sld [smem:[#allocation2]]  ;;  %vm1724_vm2 = vcmask 130048  }
  0x31   : > { %p272_p2 = scmp.lt.s32.totalorder %s2222_s8, 63  ;;  %s2284_s19 = sld [smem:[#allocation2 + $0x80]] }
  0x32   : > { %s2289_s20 = sld [smem:[#allocation2 + $0x100]]  ;;  %s2281_s22 = sld [smem:[#allocation2 + $0x1]] }
  0x33   : > { %s3135_s8 = smov (!%p272_p2, %s2222_s8), 63  ;;  %s2294_s21 = sld [smem:[#allocation2 + $0x180]] }
  0x34   : > { %s2589_s9 = sshll.u32 %s3135_s8, 4  ;;  %s2226_s10 = sshll.u32 %s3135_s8, 2 }
  0x35   : > { %s2595_s13 = scalar_lea.vmem %s3120_s2, %s2589_s9  ;;  %s2600_s16 = scalar_lea.vmem %s3121_s3, %s2226_s10 }
  0x36   : > { %v330_v0 = vld [vmem:[%s2600_s16] sm:$0xf]  ;;  %v331_v1 = vld [vmem:[%s2600_s16 + $0x4] sm:$0xf]  ;;  %v300_v3 = vld [vmem:[%s2595_s13 + $0x10] sm:$0xff]  ;;  %s2285_s23 = sld [smem:[#allocation2 + $0x81]]  ;;  %v2714_v48 = vstv %s1757_s17 }
  0x37   : > { %v298_v2 = vld [vmem:[%s2595_s13] sm:$0xff]  ;;  %2352 = vmatprep.subr.msk.mxu0 %vm353_vm0, %v330_v0  ;;  %2357 = vmatprep.subr.msk.mxu1 %vm353_vm0, %v331_v1  ;;  %v299_v4 = vld [vmem:[%s2595_s13 + $0x8] sm:$0xff]  ;;  %v301_v5 = vld [vmem:[%s2595_s13 + $0x18] sm:$0xff]  ;;  %s2290_s24 = sld [smem:[#allocation2 + $0x101]]  ;;  %s2282_s26 = sld [smem:[#allocation2 + $0x2]]  ;;  %v2716_v49 = vstv %s2284_s19 }
  0x38   : > { %2353 = vmatpush3.msk.msra.mxu0 %vm353_vm0, %v330_v0  ;;  %2354 = vmatprep.mubr.msk.f32.mxu0 %vm346_vm1, %v298_v2  ;;  %v332_v6 = vld [vmem:[%s2600_s16 + $0x8] sm:$0xf]  ;;  %v333_v7 = vld [vmem:[%s2600_s16 + $0xc] sm:$0xf]  ;;  %v302_v8 = vld [vmem:[%s2595_s13 + $0x20] sm:$0xff]  ;;  %s2295_s25 = sld [smem:[#allocation2 + $0x181]]  ;;  %v2718_v50 = vstv %s2289_s20  ;;  %s2820_s20 = scalar_lea.vmem %s3123_s5, %s2589_s9 }
  0x39   : > { %2358 = vmatpush3.msk.msra.mxu1 %vm353_vm0, %v331_v1  ;;  %2359 = vmatprep.mubr.msk.f32.mxu1 %vm346_vm1, %v300_v3  ;;  %v304_v9 = vld [vmem:[%s2595_s13 + $0x30] sm:$0xff]  ;;  %v303_v10 = vld [vmem:[%s2595_s13 + $0x28] sm:$0xff]  ;;  %v305_v11 = vld [vmem:[%s2595_s13 + $0x38] sm:$0xff]  ;;  %s2286_s27 = sld [smem:[#allocation2 + $0x82]]  ;;  %s2283_s30 = sld [smem:[#allocation2 + $0x3]]  ;;  %v2720_v51 = vstv %s2294_s21 }
  0x3a   : > { %2355 = vmatmul.mubr.msk.f32.vlgmr.msra.gmra.mrb[0].mxu0 %vm346_vm1, %v299_v4  ;;  %2360 = vmatmul.mubr.msk.f32.vlgmr.msra.gmra.mrb[0].mxu1 %vm346_vm1, %v301_v5  ;;  %v334_v12 = vld [vmem:[%s2600_s16 + $0x10] sm:$0xf]  ;;  %v335_v13 = vld [vmem:[%s2600_s16 + $0x14] sm:$0xf]  ;;  %v306_v14 = vld [vmem:[%s2595_s13 + $0x40] sm:$0xff]  ;;  %s2291_s28 = sld [smem:[#allocation2 + $0x102]]  ;;  %v2722_v52 = vstv %s2281_s22 }
  0x3b   : > { %2362 = vmatprep.subr.msk.mxu0 %vm353_vm0, %v332_v6  ;;  %2367 = vmatprep.subr.msk.mxu1 %vm353_vm0, %v333_v7  ;;  %v308_v15 = vld [vmem:[%s2595_s13 + $0x50] sm:$0xff]  ;;  %v307_v16 = vld [vmem:[%s2595_s13 + $0x48] sm:$0xff]  ;;  %v309_v17 = vld [vmem:[%s2595_s13 + $0x58] sm:$0xff]  ;;  %s2296_s29 = sld [smem:[#allocation2 + $0x182]]  ;;  %s2287_s6 = sld [smem:[#allocation2 + $0x83]] }
  0x3c   : > { %2363 = vmatpush3.msk.msra.mxu0 %vm353_vm0, %v332_v6  ;;  %2364 = vmatprep.mubr.msk.f32.mxu0 %vm346_vm1, %v302_v8  ;;  %v336_v18 = vld [vmem:[%s2600_s16 + $0x18] sm:$0xf]  ;;  %v337_v19 = vld [vmem:[%s2600_s16 + $0x1c] sm:$0xf]  ;;  %v310_v20 = vld [vmem:[%s2595_s13 + $0x60] sm:$0xff]  ;;  %s2292_s7 = sld [smem:[#allocation2 + $0x103]]  ;;  %v2724_v53 = vstv %s2285_s23 }
  0x3d   : > { %2368 = vmatpush3.msk.msra.mxu1 %vm353_vm0, %v333_v7  ;;  %2369 = vmatprep.mubr.msk.f32.mxu1 %vm346_vm1, %v304_v9  ;;  %v312_v21 = vld [vmem:[%s2595_s13 + $0x70] sm:$0xff]  ;;  %v311_v22 = vld [vmem:[%s2595_s13 + $0x68] sm:$0xff]  ;;  %v313_v23 = vld [vmem:[%s2595_s13 + $0x78] sm:$0xff]  ;;  %s2297_s8 = sld [smem:[#allocation2 + $0x183]]  ;;  %s1821_s10 = sld [smem:[#allocation4]]  ;;  %v2726_v54 = vstv %s2290_s24 }
  0x3e   : > { %2365 = vmatmul.mubr.msk.f32.vlgmr.msra.gmra.mrb[2].mxu0 %vm346_vm1, %v303_v10  ;;  %2370 = vmatmul.mubr.msk.f32.vlgmr.msra.gmra.mrb[2].mxu1 %vm346_vm1, %v305_v11  ;;  %v338_v24 = vld [vmem:[%s2600_s16 + $0x20] sm:$0xf]  ;;  %v339_v25 = vld [vmem:[%s2600_s16 + $0x24] sm:$0xf]  ;;  %v316_v27 = vld [vmem:[%s2595_s13 + $0x90] sm:$0xff]  ;;  %s2288_s11 = sld [smem:[#allocation4 + $0x1]]  ;;  %v2728_v55 = vstv %s2295_s25 }
  0x3f   : > { %2372 = vmatprep.subr.msk.mxu0 %vm353_vm0, %v334_v12  ;;  %2377 = vmatprep.subr.msk.mxu1 %vm353_vm0, %v335_v13  ;;  %v314_v26 = vld [vmem:[%s2595_s13 + $0x80] sm:$0xff]  ;;  %v315_v28 = vld [vmem:[%s2595_s13 + $0x88] sm:$0xff]  ;;  %v317_v29 = vld [vmem:[%s2595_s13 + $0x98] sm:$0xff]  ;;  %s2293_s12 = sld [smem:[#allocation4 + $0x2]]  ;;  %v2730_v56 = vstv %s2282_s26 }
  0x40   : > { %2373 = vmatpush3.msk.msra.mxu0 %vm353_vm0, %v334_v12  ;;  %2374 = vmatprep.mubr.msk.f32.mxu0 %vm346_vm1, %v306_v14  ;;  %v340_v30 = vld [vmem:[%s2600_s16 + $0x28] sm:$0xf]  ;;  %v341_v31 = vld [vmem:[%s2600_s16 + $0x2c] sm:$0xf]  ;;  %v318_v32 = vld [vmem:[%s2595_s13 + $0xa0] sm:$0xff]  ;;  %v2732_v57 = vstv %s2286_s27 }
  0x41   : > { %2378 = vmatpush3.msk.msra.mxu1 %vm353_vm0, %v335_v13  ;;  %2379 = vmatprep.mubr.msk.f32.mxu1 %vm346_vm1, %v308_v15  ;;  %v320_v33 = vld [vmem:[%s2595_s13 + $0xb0] sm:$0xff]  ;;  %v319_v34 = vld [vmem:[%s2595_s13 + $0xa8] sm:$0xff]  ;;  %v321_v35 = vld [vmem:[%s2595_s13 + $0xb8] sm:$0xff]  ;;  %v2734_v58 = vstv %s2291_s28 }
  0x42   : > { %2375 = vmatmul.mubr.msk.f32.vlgmr.msra.gmra.mrb[4].mxu0 %vm346_vm1, %v307_v16  ;;  %2380 = vmatmul.mubr.msk.f32.vlgmr.msra.gmra.mrb[4].mxu1 %vm346_vm1, %v309_v17  ;;  %v342_v36 = vld [vmem:[%s2600_s16 + $0x30] sm:$0xf]  ;;  %v343_v37 = vld [vmem:[%s2600_s16 + $0x34] sm:$0xf]  ;;  %v322_v38 = vld [vmem:[%s2595_s13 + $0xc0] sm:$0xff]  ;;  %v2736_v59 = vstv %s2296_s29 }
  0x43   : > { %2382 = vmatprep.subr.msk.mxu0 %vm353_vm0, %v336_v18  ;;  %2387 = vmatprep.subr.msk.mxu1 %vm353_vm0, %v337_v19  ;;  %v324_v39 = vld [vmem:[%s2595_s13 + $0xd0] sm:$0xff]  ;;  %v323_v40 = vld [vmem:[%s2595_s13 + $0xc8] sm:$0xff]  ;;  %v325_v41 = vld [vmem:[%s2595_s13 + $0xd8] sm:$0xff]  ;;  %v2744_v62 = vstv %s2283_s30 }
  0x44   : > { %2383 = vmatpush3.msk.msra.mxu0 %vm353_vm0, %v336_v18  ;;  %2384 = vmatprep.mubr.msk.f32.mxu0 %vm346_vm1, %v310_v20  ;;  %v344_v42 = vld [vmem:[%s2600_s16 + $0x38] sm:$0xf]  ;;  %v345_v43 = vld [vmem:[%s2600_s16 + $0x3c] sm:$0xf]  ;;  %v326_v44 = vld [vmem:[%s2595_s13 + $0xe0] sm:$0xff]  ;;  %s2742_s16 = scalar_lea.vmem %s3122_s4, %s2589_s9  ;;  %v2746_v63 = vstv %s2287_s6 }
  0x45   : > { %2388 = vmatpush3.msk.msra.mxu1 %vm353_vm0, %v337_v19  ;;  %2389 = vmatprep.mubr.msk.f32.mxu1 %vm346_vm1, %v312_v21  ;;  %v328_v45 = vld [vmem:[%s2595_s13 + $0xf0] sm:$0xff]  ;;  %v327_v46 = vld [vmem:[%s2595_s13 + $0xe8] sm:$0xff]  ;;  %v329_v47 = vld [vmem:[%s2595_s13 + $0xf8] sm:$0xff]  ;;  %s2298_s13 = sld [smem:[#allocation4 + $0x3]]  ;;  %v2748_v0 = vstv %s2292_s7 }
  0x46   : > { %2385 = vmatmul.mubr.msk.f32.vlgmr.msra.gmra.mrb[6].mxu0 %vm346_vm1, %v311_v22  ;;  %2390 = vmatmul.mubr.msk.f32.vlgmr.msra.gmra.mrb[6].mxu1 %vm346_vm1, %v313_v23  ;;  %v2750_v1 = vstv %s2297_s8  ;;  %v2752_v6 = vstv %s1821_s10  ;;  %v2754_v7 = vstv %s2288_s11  ;;  %v2756_v10 = vstv %s2293_s12 }
  0x47   : > { %2392 = vmatprep.subr.msk.mxu0 %vm353_vm0, %v338_v24  ;;  %2397 = vmatprep.subr.msk.mxu1 %vm353_vm0, %v339_v25 }
  0x48   : > { %2393 = vmatpush3.msk.msra.mxu0 %vm353_vm0, %v338_v24  ;;  %2394 = vmatprep.mubr.msk.f32.mxu0 %vm346_vm1, %v314_v26 }
  0x49   : > { %2398 = vmatpush3.msk.msra.mxu1 %vm353_vm0, %v339_v25  ;;  %2399 = vmatprep.mubr.msk.f32.mxu1 %vm346_vm1, %v316_v27 }
  0x4a   : > { %2395 = vmatmul.mubr.msk.f32.vlgmr.msra.gmra.mrb[8].mxu0 %vm346_vm1, %v315_v28  ;;  %2400 = vmatmul.mubr.msk.f32.vlgmr.msra.gmra.mrb[8].mxu1 %vm346_vm1, %v317_v29 }
  0x4b   : > { %2402 = vmatprep.subr.msk.mxu0 %vm353_vm0, %v340_v30  ;;  %2407 = vmatprep.subr.msk.mxu1 %vm353_vm0, %v341_v31  ;;  %v2758_v11 = vstv %s2298_s13 }
  0x4c   : > { %2403 = vmatpush3.msk.msra.mxu0 %vm353_vm0, %v340_v30  ;;  %2404 = vmatprep.mubr.msk.f32.mxu0 %vm346_vm1, %v318_v32 }
  0x4d   : > { %2408 = vmatpush3.msk.msra.mxu1 %vm353_vm0, %v341_v31  ;;  %2409 = vmatprep.mubr.msk.f32.mxu1 %vm346_vm1, %v320_v33 }
  0x4e   : > { %2405 = vmatmul.mubr.msk.f32.vlgmr.msra.gmra.mrb[10].mxu0 %vm346_vm1, %v319_v34  ;;  %2410 = vmatmul.mubr.msk.f32.vlgmr.msra.gmra.mrb[10].mxu1 %vm346_vm1, %v321_v35 }
  0x4f   : > { %2412 = vmatprep.subr.msk.mxu0 %vm353_vm0, %v342_v36  ;;  %2417 = vmatprep.subr.msk.mxu1 %vm353_vm0, %v343_v37 }
  0x50   : > { %2413 = vmatpush3.msk.msra.mxu0 %vm353_vm0, %v342_v36  ;;  %2414 = vmatprep.mubr.msk.f32.mxu0 %vm346_vm1, %v322_v38 }
  0x51   : > { %2418 = vmatpush3.msk.msra.mxu1 %vm353_vm0, %v343_v37  ;;  %2419 = vmatprep.mubr.msk.f32.mxu1 %vm346_vm1, %v324_v39 }
  0x52   : > { %2415 = vmatmul.mubr.msk.f32.vlgmr.msra.gmra.mrb[12].mxu0 %vm346_vm1, %v323_v40  ;;  %2420 = vmatmul.mubr.msk.f32.vlgmr.msra.gmra.mrb[12].mxu1 %vm346_vm1, %v325_v41 }
  0x53   : > { %2422 = vmatprep.subr.msk.mxu0 %vm353_vm0, %v344_v42  ;;  %2427 = vmatprep.subr.msk.mxu1 %vm353_vm0, %v345_v43 }
  0x54   : > { %2423 = vmatpush3.msk.msra.mxu0 %vm353_vm0, %v344_v42  ;;  %2424 = vmatprep.mubr.msk.f32.mxu0 %vm346_vm1, %v326_v44 }
  0x55   : > { %2428 = vmatpush3.msk.msra.mxu1 %vm353_vm0, %v345_v43  ;;  %2429 = vmatprep.mubr.msk.f32.mxu1 %vm346_vm1, %v328_v45 }
  0x56   : > { %2425 = vmatmul.mubr.msk.f32.vlgmr.msra.gmra.mrb[14].mxu0 %vm346_vm1, %v327_v46  ;;  %2430 = vmatmul.mubr.msk.f32.vlgmr.msra.gmra.mrb[14].mxu1 %vm346_vm1, %v329_v47 }
 0x10d   : > { %v2356_v60 = vpop.f32.mrb[0].mxu0  ;;  %v2361_v61 = vpop.f32.mrb[0].mxu1 }
 0x10e   : > { %v1693_v2 = vmul.f32 0.5, %v2356_v60  ;;  %v1695_v3 = vmul.f32 0.5, %v2361_v61  ;;  %v423_v4 = vpop.f32.mrb[1].mxu0  ;;  %v507_v5 = vpop.f32.mrb[1].mxu1 }
 0x10f   : > { %v1692_v8 = vmul.f32 0.5, %v423_v4  ;;  %v1694_v9 = vmul.f32 0.5, %v507_v5 }
 0x110   : > { %1726 = vst.msk [vmem:[%s2742_s16 + $0x8] sm:$0xff] %vm1724_vm2, %v1693_v2  ;;  %v1760_v12 = vmul.f32 %v2714_v48, %v1693_v2  ;;  %v1834_v13 = vmul.f32 %v2716_v49, %v1693_v2  ;;  %v1908_v14 = vmul.f32 %v2718_v50, %v1693_v2  ;;  %v1982_v15 = vmul.f32 %v2720_v51, %v1693_v2 }
 0x111   : > { %1728 = vst.msk [vmem:[%s2742_s16 + $0x18] sm:$0xff] %vm1724_vm2, %v1695_v3  ;;  %v1770_v16 = vmul.f32 %v2722_v52, %v1695_v3  ;;  %v1844_v17 = vmul.f32 %v2724_v53, %v1695_v3  ;;  %v1918_v18 = vmul.f32 %v2726_v54, %v1695_v3  ;;  %v1992_v19 = vmul.f32 %v2728_v55, %v1695_v3  ;;  %v2366_v20 = vpop.f32.mrb[2].mxu0  ;;  %v2371_v21 = vpop.f32.mrb[2].mxu1 }
 0x112   : > { %1725 = vst.msk [vmem:[%s2742_s16] sm:$0xff] %vm1724_vm2, %v1692_v8  ;;  %1727 = vst.msk [vmem:[%s2742_s16 + $0x10] sm:$0xff] %vm1724_vm2, %v1694_v9  ;;  %v1759_v22 = vmul.f32 %v2714_v48, %v1692_v8  ;;  %v1833_v23 = vmul.f32 %v2716_v49, %v1692_v8  ;;  %v1907_v24 = vmul.f32 %v2718_v50, %v1692_v8  ;;  %v591_v26 = vpop.f32.mrb[3].mxu0  ;;  %v675_v27 = vpop.f32.mrb[3].mxu1  ;;  %v1697_v36 = vmul.f32 0.5, %v2366_v20 }
 0x113   : > { %v1981_v25 = vmul.f32 %v2720_v51, %v1692_v8  ;;  %v1778_v28 = vadd.f32 %v1770_v16, %v1760_v12  ;;  %v1852_v29 = vadd.f32 %v1844_v17, %v1834_v13  ;;  %v1926_v30 = vadd.f32 %v1918_v18, %v1908_v14 }
 0x114   : > { %v2000_v31 = vadd.f32 %v1992_v19, %v1982_v15  ;;  %v1769_v32 = vmul.f32 %v2722_v52, %v1694_v9  ;;  %v1843_v33 = vmul.f32 %v2724_v53, %v1694_v9  ;;  %v1917_v34 = vmul.f32 %v2726_v54, %v1694_v9  ;;  %1730 = vst.msk [vmem:[%s2742_s16 + $0x28] sm:$0xff] %vm1724_vm2, %v1697_v36 }
 0x115   : > { %v1991_v35 = vmul.f32 %v2728_v55, %v1694_v9  ;;  %v1696_v37 = vmul.f32 0.5, %v591_v26  ;;  %v1699_v38 = vmul.f32 0.5, %v2371_v21  ;;  %v1698_v39 = vmul.f32 0.5, %v675_v27  ;;  %v2784_v40 = vpop.f32.mrb[4].mxu0  ;;  %v2786_v41 = vpop.f32.mrb[4].mxu1 }
 0x116   : > { %v1777_v42 = vadd.f32 %v1769_v32, %v1759_v22  ;;  %v1851_v43 = vadd.f32 %v1843_v33, %v1833_v23  ;;  %v1925_v44 = vadd.f32 %v1917_v34, %v1907_v24  ;;  %v759_v46 = vpop.f32.mrb[5].mxu0  ;;  %v843_v47 = vpop.f32.mrb[5].mxu1  ;;  %v1788_v60 = vmul.f32 %v2730_v56, %v1697_v36 }
 0x117   : > { %v1999_v45 = vadd.f32 %v1991_v35, %v1981_v25  ;;  %v1862_v61 = vmul.f32 %v2732_v57, %v1697_v36  ;;  %v1936_v2 = vmul.f32 %v2734_v58, %v1697_v36  ;;  %v2010_v3 = vmul.f32 %v2736_v59, %v1697_v36  ;;  %1729 = vst.msk [vmem:[%s2742_s16 + $0x20] sm:$0xff] %vm1724_vm2, %v1696_v37 }
 0x118   : > { %1732 = vst.msk [vmem:[%s2742_s16 + $0x38] sm:$0xff] %vm1724_vm2, %v1699_v38  ;;  %1731 = vst.msk [vmem:[%s2742_s16 + $0x30] sm:$0xff] %vm1724_vm2, %v1698_v39  ;;  %v1787_v4 = vmul.f32 %v2730_v56, %v1696_v37  ;;  %v1861_v5 = vmul.f32 %v2732_v57, %v1696_v37  ;;  %v1935_v8 = vmul.f32 %v2734_v58, %v1696_v37 }
 0x119   : > { %v2009_v9 = vmul.f32 %v2736_v59, %v1696_v37  ;;  %v1796_v12 = vadd.f32 %v1788_v60, %v1778_v28  ;;  %v1870_v13 = vadd.f32 %v1862_v61, %v1852_v29  ;;  %v1944_v14 = vadd.f32 %v1936_v2, %v1926_v30  ;;  %v2386_v16 = vpop.f32.mrb[6].mxu0  ;;  %v2391_v17 = vpop.f32.mrb[6].mxu1 }
 0x11a   : > { %v2018_v15 = vadd.f32 %v2010_v3, %v2000_v31  ;;  %v1795_v18 = vadd.f32 %v1787_v4, %v1777_v42  ;;  %v1869_v19 = vadd.f32 %v1861_v5, %v1851_v43  ;;  %v1943_v20 = vadd.f32 %v1935_v8, %v1925_v44  ;;  %v927_v22 = vpop.f32.mrb[7].mxu0  ;;  %v1011_v23 = vpop.f32.mrb[7].mxu1 }
 0x11b   : > { %v2017_v21 = vadd.f32 %v2009_v9, %v1999_v45  ;;  %v1806_v24 = vmul.f32 %v2744_v62, %v1699_v38  ;;  %v1880_v25 = vmul.f32 %v2746_v63, %v1699_v38  ;;  %v1954_v26 = vmul.f32 %v2748_v0, %v1699_v38 }
 0x11c   : > { %v2028_v27 = vmul.f32 %v2750_v1, %v1699_v38  ;;  %v1805_v28 = vmul.f32 %v2744_v62, %v1698_v39  ;;  %v1879_v29 = vmul.f32 %v2746_v63, %v1698_v39  ;;  %v1953_v30 = vmul.f32 %v2748_v0, %v1698_v39 }
 0x11d   : > { %v2027_v31 = vmul.f32 %v2750_v1, %v1698_v39  ;;  %v1814_v32 = vadd.f32 %v1806_v24, %v1796_v12  ;;  %v1888_v33 = vadd.f32 %v1880_v25, %v1870_v13  ;;  %v1962_v34 = vadd.f32 %v1954_v26, %v1944_v14  ;;  %v2812_v36 = vpop.f32.mrb[8].mxu0  ;;  %v2814_v37 = vpop.f32.mrb[8].mxu1 }
 0x11e   : > { %v2036_v35 = vadd.f32 %v2028_v27, %v2018_v15  ;;  %v1813_v38 = vadd.f32 %v1805_v28, %v1795_v18  ;;  %v1887_v42 = vadd.f32 %v1879_v29, %v1869_v19  ;;  %v1961_v39 = vadd.f32 %v1953_v30, %v1943_v20  ;;  %v2822_v44 = vpop.f32.mrb[9].mxu0  ;;  %v2824_v45 = vpop.f32.mrb[9].mxu1 }
 0x11f   : > { %v2035_v43 = vadd.f32 %v2027_v31, %v2017_v21  ;;  %v1824_v60 = vadd.f32 %v2752_v6, %v1814_v32  ;;  %v1898_v61 = vadd.f32 %v2754_v7, %v1888_v33  ;;  %v1972_v2 = vadd.f32 %v2756_v10, %v1962_v34 }
 0x120   : > { %v2046_v3 = vadd.f32 %v2758_v11, %v2036_v35  ;;  %v1823_v4 = vadd.f32 %v2752_v6, %v1813_v38  ;;  %v1897_v5 = vadd.f32 %v2754_v7, %v1887_v42  ;;  %v1971_v8 = vadd.f32 %v2756_v10, %v1961_v39 }
 0x121   : > { %v2045_v9 = vadd.f32 %v2758_v11, %v2035_v43  ;;  %2054 = vst.msk [vmem:[%s2820_s20 + $0x8] sm:$0xff] %vm1724_vm2, %v1824_v60  ;;  %2056 = vst.msk [vmem:[%s2820_s20 + $0x18] sm:$0xff] %vm1724_vm2, %v1898_v61  ;;  %v1701_v12 = vmul.f32 0.5, %v2784_v40  ;;  %v1703_v13 = vmul.f32 0.5, %v2786_v41  ;;  %v1700_v14 = vmul.f32 0.5, %v759_v46  ;;  %v2844_v18 = vpop.f32.mrb[10].mxu0 }
 0x122   : > { %2058 = vst.msk [vmem:[%s2820_s20 + $0x28] sm:$0xff] %vm1724_vm2, %v1972_v2  ;;  %2060 = vst.msk [vmem:[%s2820_s20 + $0x38] sm:$0xff] %vm1724_vm2, %v2046_v3  ;;  %v1702_v15 = vmul.f32 0.5, %v843_v47  ;;  %v2846_v19 = vpop.f32.mrb[10].mxu1  ;;  %v1705_v40 = vmul.f32 0.5, %v2386_v16  ;;  %v1704_v20 = vmul.f32 0.5, %v927_v22 }
 0x123   : > { %2053 = vst.msk [vmem:[%s2820_s20] sm:$0xff] %vm1724_vm2, %v1823_v4  ;;  %2055 = vst.msk [vmem:[%s2820_s20 + $0x10] sm:$0xff] %vm1724_vm2, %v1897_v5  ;;  %v1707_v41 = vmul.f32 0.5, %v2391_v17  ;;  %v2856_v46 = vmul.f32 0.5, %v1011_v23  ;;  %v2858_v47 = vpop.f32.mrb[11].mxu0  ;;  %v2860_v21 = vpop.f32.mrb[11].mxu1  ;;  %v1762_v24 = vmul.f32 %v2714_v48, %v1701_v12  ;;  %v1836_v25 = vmul.f32 %v2716_v49, %v1701_v12 }
 0x124   : > { %2057 = vst.msk [vmem:[%s2820_s20 + $0x20] sm:$0xff] %vm1724_vm2, %v1971_v8  ;;  %2059 = vst.msk [vmem:[%s2820_s20 + $0x30] sm:$0xff] %vm1724_vm2, %v2045_v9  ;;  %v1910_v16 = vmul.f32 %v2718_v50, %v1701_v12  ;;  %v1984_v17 = vmul.f32 %v2720_v51, %v1701_v12  ;;  %v1772_v22 = vmul.f32 %v2722_v52, %v1703_v13 }
 0x125   : > { %1734 = vst.msk [vmem:[%s2742_s16 + $0x48] sm:$0xff] %vm1724_vm2, %v1701_v12  ;;  %1736 = vst.msk [vmem:[%s2742_s16 + $0x58] sm:$0xff] %vm1724_vm2, %v1703_v13  ;;  %v1846_v23 = vmul.f32 %v2724_v53, %v1703_v13  ;;  %v1920_v26 = vmul.f32 %v2726_v54, %v1703_v13  ;;  %v1994_v27 = vmul.f32 %v2728_v55, %v1703_v13  ;;  %v2891_v32 = vpop.f32.mrb[12].mxu0  ;;  %v2893_v33 = vpop.f32.mrb[12].mxu1 }
 0x126   : > { %1733 = vst.msk [vmem:[%s2742_s16 + $0x40] sm:$0xff] %vm1724_vm2, %v1700_v14  ;;  %1735 = vst.msk [vmem:[%s2742_s16 + $0x50] sm:$0xff] %vm1724_vm2, %v1702_v15  ;;  %v1761_v28 = vmul.f32 %v2714_v48, %v1700_v14  ;;  %v1835_v29 = vmul.f32 %v2716_v49, %v1700_v14  ;;  %v1909_v30 = vmul.f32 %v2718_v50, %v1700_v14  ;;  %v2895_v39 = vpop.f32.mrb[13].mxu0  ;;  %v2897_v43 = vpop.f32.mrb[13].mxu1 }
 0x127   : > { %1738 = vst.msk [vmem:[%s2742_s16 + $0x68] sm:$0xff] %vm1724_vm2, %v1705_v40  ;;  %1737 = vst.msk [vmem:[%s2742_s16 + $0x60] sm:$0xff] %vm1724_vm2, %v1704_v20  ;;  %v1983_v31 = vmul.f32 %v2720_v51, %v1700_v14  ;;  %v1780_v34 = vadd.f32 %v1772_v22, %v1762_v24  ;;  %v1854_v35 = vadd.f32 %v1846_v23, %v1836_v25 }
 0x128   : > { %1740 = vst.msk [vmem:[%s2742_s16 + $0x78] sm:$0xff] %vm1724_vm2, %v1707_v41  ;;  %1739 = vst.msk [vmem:[%s2742_s16 + $0x70] sm:$0xff] %vm1724_vm2, %v2856_v46  ;;  %v1928_v38 = vadd.f32 %v1920_v26, %v1910_v16  ;;  %v2002_v42 = vadd.f32 %v1994_v27, %v1984_v17  ;;  %v1771_v60 = vmul.f32 %v2722_v52, %v1702_v15 }
 0x129   : > { %3132 = vst [vmem:[#allocation8_spill] sm:$0xff] %v2897_v43  ;;  %v1845_v61 = vmul.f32 %v2724_v53, %v1702_v15  ;;  %v1919_v2 = vmul.f32 %v2726_v54, %v1702_v15  ;;  %v1993_v3 = vmul.f32 %v2728_v55, %v1702_v15  ;;  %v1790_v4 = vmul.f32 %v2730_v56, %v1705_v40  ;;  %v2907_v25 = vpop.f32.mrb[14].mxu0  ;;  %v2909_v16 = vpop.f32.mrb[14].mxu1 }
 0x12a   : > { %v1864_v5 = vmul.f32 %v2732_v57, %v1705_v40  ;;  %v1938_v8 = vmul.f32 %v2734_v58, %v1705_v40  ;;  %v2012_v9 = vmul.f32 %v2736_v59, %v1705_v40  ;;  %v1779_v12 = vadd.f32 %v1771_v60, %v1761_v28  ;;  %v2911_v26 = vpop.f32.mrb[15].mxu0  ;;  %v2913_v27 = vpop.f32.mrb[15].mxu1 }
 0x12b   : > { %v1853_v13 = vadd.f32 %v1845_v61, %v1835_v29  ;;  %v1927_v14 = vadd.f32 %v1919_v2, %v1909_v30  ;;  %v2001_v24 = vadd.f32 %v1993_v3, %v1983_v31  ;;  %v1798_v17 = vadd.f32 %v1790_v4, %v1780_v34 }
 0x12c   : > { %v1872_v22 = vadd.f32 %v1864_v5, %v1854_v35  ;;  %v1946_v23 = vadd.f32 %v1938_v8, %v1928_v38  ;;  %v2020_v15 = vadd.f32 %v2012_v9, %v2002_v42  ;;  %v1789_v43 = vmul.f32 %v2730_v56, %v1704_v20 }
 0x12d   : > { %v1863_v40 = vmul.f32 %v2732_v57, %v1704_v20  ;;  %v1937_v28 = vmul.f32 %v2734_v58, %v1704_v20  ;;  %v2011_v29 = vmul.f32 %v2736_v59, %v1704_v20  ;;  %v1808_v30 = vmul.f32 %v2744_v62, %v1707_v41 }
 0x12e   : > { %v1882_v31 = vmul.f32 %v2746_v63, %v1707_v41  ;;  %v1956_v34 = vmul.f32 %v2748_v0, %v1707_v41  ;;  %v2030_v35 = vmul.f32 %v2750_v1, %v1707_v41  ;;  %v1797_v38 = vadd.f32 %v1789_v43, %v1779_v12 }
 0x12f   : > { %v1871_v42 = vadd.f32 %v1863_v40, %v1853_v13  ;;  %v1945_v60 = vadd.f32 %v1937_v28, %v1927_v14  ;;  %v2019_v61 = vadd.f32 %v2011_v29, %v2001_v24  ;;  %v1816_v2 = vadd.f32 %v1808_v30, %v1798_v17 }
 0x130   : > { %v1890_v3 = vadd.f32 %v1882_v31, %v1872_v22  ;;  %v1964_v4 = vadd.f32 %v1956_v34, %v1946_v23  ;;  %v2038_v5 = vadd.f32 %v2030_v35, %v2020_v15  ;;  %v1807_v20 = vmul.f32 %v2744_v62, %v2856_v46 }
 0x131   : > { %v1881_v8 = vmul.f32 %v2746_v63, %v2856_v46  ;;  %v1955_v41 = vmul.f32 %v2748_v0, %v2856_v46  ;;  %v2029_v43 = vmul.f32 %v2750_v1, %v2856_v46  ;;  %v1826_v9 = vadd.f32 %v2752_v6, %v1816_v2 }
 0x132   : > { %v1900_v12 = vadd.f32 %v2754_v7, %v1890_v3  ;;  %v1974_v13 = vadd.f32 %v2756_v10, %v1964_v4  ;;  %v2048_v14 = vadd.f32 %v2758_v11, %v2038_v5  ;;  %v1815_v24 = vadd.f32 %v1807_v20, %v1797_v38 }
 0x133   : > { %v1889_v17 = vadd.f32 %v1881_v8, %v1871_v42  ;;  %v1963_v22 = vadd.f32 %v1955_v41, %v1945_v60  ;;  %v2037_v23 = vadd.f32 %v2029_v43, %v2019_v61  ;;  %2062 = vst.msk [vmem:[%s2820_s20 + $0x48] sm:$0xff] %vm1724_vm2, %v1826_v9  ;;  %v1709_v46 = vmul.f32 0.5, %v2812_v36 }
 0x134   : > { %2064 = vst.msk [vmem:[%s2820_s20 + $0x58] sm:$0xff] %vm1724_vm2, %v1900_v12  ;;  %2066 = vst.msk [vmem:[%s2820_s20 + $0x68] sm:$0xff] %vm1724_vm2, %v1974_v13  ;;  %v1711_v15 = vmul.f32 0.5, %v2814_v37  ;;  %v1708_v40 = vmul.f32 0.5, %v2822_v44  ;;  %v1710_v28 = vmul.f32 0.5, %v2824_v45  ;;  %v1825_v29 = vadd.f32 %v2752_v6, %v1815_v24 }
 0x135   : > { %2068 = vst.msk [vmem:[%s2820_s20 + $0x78] sm:$0xff] %vm1724_vm2, %v2048_v14  ;;  %v1899_v30 = vadd.f32 %v2754_v7, %v1889_v17  ;;  %v1973_v31 = vadd.f32 %v2756_v10, %v1963_v22  ;;  %v2047_v34 = vadd.f32 %v2758_v11, %v2037_v23  ;;  %1742 = vst.msk [vmem:[%s2742_s16 + $0x88] sm:$0xff] %vm1724_vm2, %v1709_v46  ;;  %v1713_v14 = vmul.f32 0.5, %v2844_v18 }
 0x136   : > { %v1764_v36 = vmul.f32 %v2714_v48, %v1709_v46  ;;  %v1838_v37 = vmul.f32 %v2716_v49, %v1709_v46  ;;  %v1912_v44 = vmul.f32 %v2718_v50, %v1709_v46  ;;  %v1986_v35 = vmul.f32 %v2720_v51, %v1709_v46  ;;  %1744 = vst.msk [vmem:[%s2742_s16 + $0x98] sm:$0xff] %vm1724_vm2, %v1711_v15 }
 0x137   : > { %1741 = vst.msk [vmem:[%s2742_s16 + $0x80] sm:$0xff] %vm1724_vm2, %v1708_v40  ;;  %1743 = vst.msk [vmem:[%s2742_s16 + $0x90] sm:$0xff] %vm1724_vm2, %v1710_v28  ;;  %v1774_v45 = vmul.f32 %v2722_v52, %v1711_v15  ;;  %v1848_v38 = vmul.f32 %v2724_v53, %v1711_v15  ;;  %v1922_v42 = vmul.f32 %v2726_v54, %v1711_v15  ;;  %v1712_v24 = vmul.f32 0.5, %v2858_v47 }
 0x138   : > { %2061 = vst.msk [vmem:[%s2820_s20 + $0x40] sm:$0xff] %vm1724_vm2, %v1825_v29  ;;  %2063 = vst.msk [vmem:[%s2820_s20 + $0x50] sm:$0xff] %vm1724_vm2, %v1899_v30  ;;  %v1996_v60 = vmul.f32 %v2728_v55, %v1711_v15  ;;  %v1763_v61 = vmul.f32 %v2714_v48, %v1708_v40  ;;  %v1837_v2 = vmul.f32 %v2716_v49, %v1708_v40  ;;  %v1715_v17 = vmul.f32 0.5, %v2846_v19 }
 0x139   : > { %2065 = vst.msk [vmem:[%s2820_s20 + $0x60] sm:$0xff] %vm1724_vm2, %v1973_v31  ;;  %2067 = vst.msk [vmem:[%s2820_s20 + $0x70] sm:$0xff] %vm1724_vm2, %v2047_v34  ;;  %v1911_v3 = vmul.f32 %v2718_v50, %v1708_v40  ;;  %v1985_v4 = vmul.f32 %v2720_v51, %v1708_v40  ;;  %v1782_v5 = vadd.f32 %v1774_v45, %v1764_v36  ;;  %v1714_v22 = vmul.f32 0.5, %v2860_v21 }
 0x13a   : > { %v1856_v20 = vadd.f32 %v1848_v38, %v1838_v37  ;;  %v1930_v8 = vadd.f32 %v1922_v42, %v1912_v44  ;;  %v2004_v41 = vadd.f32 %v1996_v60, %v1986_v35  ;;  %v1773_v43 = vmul.f32 %v2722_v52, %v1710_v28  ;;  %1746 = vst.msk [vmem:[%s2742_s16 + $0xa8] sm:$0xff] %vm1724_vm2, %v1713_v14 }
 0x13b   : > { %v1847_v9 = vmul.f32 %v2724_v53, %v1710_v28  ;;  %v1921_v12 = vmul.f32 %v2726_v54, %v1710_v28  ;;  %v1995_v13 = vmul.f32 %v2728_v55, %v1710_v28  ;;  %v1792_v29 = vmul.f32 %v2730_v56, %v1713_v14  ;;  %1745 = vst.msk [vmem:[%s2742_s16 + $0xa0] sm:$0xff] %vm1724_vm2, %v1712_v24 }
 0x13c   : > { %v1781_v23 = vadd.f32 %v1773_v43, %v1763_v61  ;;  %v1866_v30 = vmul.f32 %v2732_v57, %v1713_v14  ;;  %v1940_v28 = vmul.f32 %v2734_v58, %v1713_v14  ;;  %v2014_v18 = vmul.f32 %v2736_v59, %v1713_v14  ;;  %1748 = vst.msk [vmem:[%s2742_s16 + $0xb8] sm:$0xff] %vm1724_vm2, %v1715_v17 }
 0x13d   : > { %v1855_v46 = vadd.f32 %v1847_v9, %v1837_v2  ;;  %v1929_v15 = vadd.f32 %v1921_v12, %v1911_v3  ;;  %v2003_v40 = vadd.f32 %v1995_v13, %v1985_v4  ;;  %1747 = vst.msk [vmem:[%s2742_s16 + $0xb0] sm:$0xff] %vm1724_vm2, %v1714_v22  ;;  %v1791_v19 = vmul.f32 %v2730_v56, %v1712_v24 }
 0x13e   : > { %v1865_v47 = vmul.f32 %v2732_v57, %v1712_v24  ;;  %v1939_v21 = vmul.f32 %v2734_v58, %v1712_v24  ;;  %v2013_v31 = vmul.f32 %v2736_v59, %v1712_v24  ;;  %v1800_v34 = vadd.f32 %v1792_v29, %v1782_v5 }
 0x13f   : > { %v1874_v36 = vadd.f32 %v1866_v30, %v1856_v20  ;;  %v1948_v37 = vadd.f32 %v1940_v28, %v1930_v8  ;;  %v2022_v44 = vadd.f32 %v2014_v18, %v2004_v41  ;;  %v1799_v35 = vadd.f32 %v1791_v19, %v1781_v23 }
 0x140   : > { %v1873_v45 = vadd.f32 %v1865_v47, %v1855_v46  ;;  %v1947_v38 = vadd.f32 %v1939_v21, %v1929_v15  ;;  %v2021_v42 = vadd.f32 %v2013_v31, %v2003_v40  ;;  %v1810_v60 = vmul.f32 %v2744_v62, %v1715_v17  ;;  %v3133_v21 = vld [vmem:[#allocation8_spill] sm:$0xff] }
 0x141   : > { %v1884_v61 = vmul.f32 %v2746_v63, %v1715_v17  ;;  %v1958_v2 = vmul.f32 %v2748_v0, %v1715_v17  ;;  %v2032_v3 = vmul.f32 %v2750_v1, %v1715_v17  ;;  %v1809_v4 = vmul.f32 %v2744_v62, %v1714_v22 }
 0x142   : > { %v1883_v43 = vmul.f32 %v2746_v63, %v1714_v22  ;;  %v1957_v5 = vmul.f32 %v2748_v0, %v1714_v22  ;;  %v2031_v20 = vmul.f32 %v2750_v1, %v1714_v22  ;;  %v1818_v8 = vadd.f32 %v1810_v60, %v1800_v34 }
 0x143   : > { %v1892_v41 = vadd.f32 %v1884_v61, %v1874_v36  ;;  %v1966_v9 = vadd.f32 %v1958_v2, %v1948_v37  ;;  %v2040_v12 = vadd.f32 %v2032_v3, %v2022_v44  ;;  %v1817_v13 = vadd.f32 %v1809_v4, %v1799_v35 }
 0x144   : > { %v1891_v14 = vadd.f32 %v1883_v43, %v1873_v45  ;;  %v1965_v24 = vadd.f32 %v1957_v5, %v1947_v38  ;;  %v2039_v17 = vadd.f32 %v2031_v20, %v2021_v42  ;;  %v1828_v23 = vadd.f32 %v2752_v6, %v1818_v8 }
 0x145   : > { %v1902_v46 = vadd.f32 %v2754_v7, %v1892_v41  ;;  %v1976_v22 = vadd.f32 %v2756_v10, %v1966_v9  ;;  %v2050_v15 = vadd.f32 %v2758_v11, %v2040_v12  ;;  %v1827_v40 = vadd.f32 %v2752_v6, %v1817_v13 }
 0x146   : > { %v1901_v29 = vadd.f32 %v2754_v7, %v1891_v14  ;;  %v1975_v30 = vadd.f32 %v2756_v10, %v1965_v24  ;;  %v2049_v28 = vadd.f32 %v2758_v11, %v2039_v17  ;;  %2070 = vst.msk [vmem:[%s2820_s20 + $0x88] sm:$0xff] %vm1724_vm2, %v1828_v23  ;;  %v1717_v18 = vmul.f32 0.5, %v2891_v32 }
 0x147   : > { %2072 = vst.msk [vmem:[%s2820_s20 + $0x98] sm:$0xff] %vm1724_vm2, %v1902_v46  ;;  %2074 = vst.msk [vmem:[%s2820_s20 + $0xa8] sm:$0xff] %vm1724_vm2, %v1976_v22  ;;  %v1719_v19 = vmul.f32 0.5, %v2893_v33  ;;  %v1716_v47 = vmul.f32 0.5, %v2895_v39  ;;  %v1718_v31 = vmul.f32 0.5, %v3133_v21  ;;  %v1721_v34 = vmul.f32 0.5, %v2907_v25 }
 0x148   : > { %2076 = vst.msk [vmem:[%s2820_s20 + $0xb8] sm:$0xff] %vm1724_vm2, %v2050_v15  ;;  %2069 = vst.msk [vmem:[%s2820_s20 + $0x80] sm:$0xff] %vm1724_vm2, %v1827_v40  ;;  %v1720_v32 = vmul.f32 0.5, %v2911_v26  ;;  %v1723_v33 = vmul.f32 0.5, %v2909_v16  ;;  %v1722_v39 = vmul.f32 0.5, %v2913_v27  ;;  %v1766_v36 = vmul.f32 %v2714_v48, %v1717_v18 }
 0x149   : > { %2071 = vst.msk [vmem:[%s2820_s20 + $0x90] sm:$0xff] %vm1724_vm2, %v1901_v29  ;;  %2073 = vst.msk [vmem:[%s2820_s20 + $0xa0] sm:$0xff] %vm1724_vm2, %v1975_v30  ;;  %v1840_v37 = vmul.f32 %v2716_v49, %v1717_v18  ;;  %v1914_v44 = vmul.f32 %v2718_v50, %v1717_v18  ;;  %v1988_v25 = vmul.f32 %v2720_v51, %v1717_v18 }
 0x14a   : > { %2075 = vst.msk [vmem:[%s2820_s20 + $0xb0] sm:$0xff] %vm1724_vm2, %v2049_v28  ;;  %1750 = vst.msk [vmem:[%s2742_s16 + $0xc8] sm:$0xff] %vm1724_vm2, %v1717_v18  ;;  %v1776_v16 = vmul.f32 %v2722_v52, %v1719_v19  ;;  %v1850_v26 = vmul.f32 %v2724_v53, %v1719_v19  ;;  %v1924_v27 = vmul.f32 %v2726_v54, %v1719_v19 }
 0x14b   : > { %1752 = vst.msk [vmem:[%s2742_s16 + $0xd8] sm:$0xff] %vm1724_vm2, %v1719_v19  ;;  %1749 = vst.msk [vmem:[%s2742_s16 + $0xc0] sm:$0xff] %vm1724_vm2, %v1716_v47  ;;  %v1998_v35 = vmul.f32 %v2728_v55, %v1719_v19  ;;  %v1765_v45 = vmul.f32 %v2714_v48, %v1716_v47  ;;  %v1839_v38 = vmul.f32 %v2716_v49, %v1716_v47 }
 0x14c   : > { %1751 = vst.msk [vmem:[%s2742_s16 + $0xd0] sm:$0xff] %vm1724_vm2, %v1718_v31  ;;  %1754 = vst.msk [vmem:[%s2742_s16 + $0xe8] sm:$0xff] %vm1724_vm2, %v1721_v34  ;;  %v1913_v42 = vmul.f32 %v2718_v50, %v1716_v47  ;;  %v1987_v60 = vmul.f32 %v2720_v51, %v1716_v47  ;;  %v1784_v61 = vadd.f32 %v1776_v16, %v1766_v36 }
 0x14d   : > { %1753 = vst.msk [vmem:[%s2742_s16 + $0xe0] sm:$0xff] %vm1724_vm2, %v1720_v32  ;;  %1756 = vst.msk [vmem:[%s2742_s16 + $0xf8] sm:$0xff] %vm1724_vm2, %v1723_v33  ;;  %v1858_v2 = vadd.f32 %v1850_v26, %v1840_v37  ;;  %v1932_v3 = vadd.f32 %v1924_v27, %v1914_v44  ;;  %v2006_v4 = vadd.f32 %v1998_v35, %v1988_v25 }
 0x14e   : > { %1755 = vst.msk [vmem:[%s2742_s16 + $0xf0] sm:$0xff] %vm1724_vm2, %v1722_v39  ;;  %v1775_v43 = vmul.f32 %v2722_v52, %v1718_v31  ;;  %v1849_v5 = vmul.f32 %v2724_v53, %v1718_v31  ;;  %v1923_v20 = vmul.f32 %v2726_v54, %v1718_v31  ;;  %v1997_v8 = vmul.f32 %v2728_v55, %v1718_v31 }
 0x14f   : > { %v1794_v48 = vmul.f32 %v2730_v56, %v1721_v34  ;;  %v1868_v49 = vmul.f32 %v2732_v57, %v1721_v34  ;;  %v1942_v50 = vmul.f32 %v2734_v58, %v1721_v34  ;;  %v2016_v51 = vmul.f32 %v2736_v59, %v1721_v34 }
 0x150   : > { %v1783_v41 = vadd.f32 %v1775_v43, %v1765_v45  ;;  %v1857_v9 = vadd.f32 %v1849_v5, %v1839_v38  ;;  %v1931_v12 = vadd.f32 %v1923_v20, %v1913_v42  ;;  %v2005_v13 = vadd.f32 %v1997_v8, %v1987_v60 }
 0x151   : > { %v1802_v14 = vadd.f32 %v1794_v48, %v1784_v61  ;;  %v1876_v52 = vadd.f32 %v1868_v49, %v1858_v2  ;;  %v1950_v24 = vadd.f32 %v1942_v50, %v1932_v3  ;;  %v2024_v53 = vadd.f32 %v2016_v51, %v2006_v4 }
 0x152   : > { %v1793_v54 = vmul.f32 %v2730_v56, %v1720_v32  ;;  %v1867_v55 = vmul.f32 %v2732_v57, %v1720_v32  ;;  %v1941_v17 = vmul.f32 %v2734_v58, %v1720_v32  ;;  %v2015_v23 = vmul.f32 %v2736_v59, %v1720_v32 }
 0x153   : > { %v1812_v46 = vmul.f32 %v2744_v62, %v1723_v33  ;;  %v1886_v22 = vmul.f32 %v2746_v63, %v1723_v33  ;;  %v1960_v15 = vmul.f32 %v2748_v0, %v1723_v33  ;;  %v2034_v40 = vmul.f32 %v2750_v1, %v1723_v33 }
 0x154   : > { %v1801_v29 = vadd.f32 %v1793_v54, %v1783_v41  ;;  %v1875_v30 = vadd.f32 %v1867_v55, %v1857_v9  ;;  %v1949_v28 = vadd.f32 %v1941_v17, %v1931_v12  ;;  %v2023_v18 = vadd.f32 %v2015_v23, %v2005_v13 }
 0x155   : > { %v1820_v19 = vadd.f32 %v1812_v46, %v1802_v14  ;;  %v1894_v56 = vadd.f32 %v1886_v22, %v1876_v52  ;;  %v1968_v57 = vadd.f32 %v1960_v15, %v1950_v24  ;;  %v2042_v58 = vadd.f32 %v2034_v40, %v2024_v53 }
 0x156   : > { %v1811_v59 = vmul.f32 %v2744_v62, %v1722_v39  ;;  %v1885_v47 = vmul.f32 %v2746_v63, %v1722_v39  ;;  %v1959_v21 = vmul.f32 %v2748_v0, %v1722_v39  ;;  %v2033_v31 = vmul.f32 %v2750_v1, %v1722_v39 }
 0x157   : > { %v1830_v34 = vadd.f32 %v2752_v6, %v1820_v19  ;;  %v1904_v32 = vadd.f32 %v2754_v7, %v1894_v56  ;;  %v1978_v33 = vadd.f32 %v2756_v10, %v1968_v57  ;;  %v2052_v36 = vadd.f32 %v2758_v11, %v2042_v58 }
 0x158   : > { %v1819_v37 = vadd.f32 %v1811_v59, %v1801_v29  ;;  %v1893_v62 = vadd.f32 %v1885_v47, %v1875_v30  ;;  %v1967_v44 = vadd.f32 %v1959_v21, %v1949_v28  ;;  %v2041_v63 = vadd.f32 %v2033_v31, %v2023_v18 }
 0x159   : > { %2078 = vst.msk [vmem:[%s2820_s20 + $0xc8] sm:$0xff] %vm1724_vm2, %v1830_v34  ;;  %2080 = vst.msk [vmem:[%s2820_s20 + $0xd8] sm:$0xff] %vm1724_vm2, %v1904_v32 }
 0x15a   : > { %2082 = vst.msk [vmem:[%s2820_s20 + $0xe8] sm:$0xff] %vm1724_vm2, %v1978_v33  ;;  %2084 = vst.msk [vmem:[%s2820_s20 + $0xf8] sm:$0xff] %vm1724_vm2, %v2052_v36  ;;  %v1829_v0 = vadd.f32 %v2752_v6, %v1819_v37  ;;  %v1903_v1 = vadd.f32 %v2754_v7, %v1893_v62  ;;  %v1977_v39 = vadd.f32 %v2756_v10, %v1967_v44 }
 0x15b   : > { %v2051_v25 = vadd.f32 %v2758_v11, %v2041_v63 }
 0x15c   : > { %2077 = vst.msk [vmem:[%s2820_s20 + $0xc0] sm:$0xff] %vm1724_vm2, %v1829_v0  ;;  %2079 = vst.msk [vmem:[%s2820_s20 + $0xd0] sm:$0xff] %vm1724_vm2, %v1903_v1 }
 0x15d   : > { %2081 = vst.msk [vmem:[%s2820_s20 + $0xe0] sm:$0xff] %vm1724_vm2, %v1977_v39  ;;  %2083 = vst.msk [vmem:[%s2820_s20 + $0xf0] sm:$0xff] %vm1724_vm2, %v2051_v25 }
 0x15e PF: > { %s18_s18 = sadd.s32 1, %s2505_s18  }
 0x15f   : > { %p15_p3 = scmp.ge.s32.totalorder %s18_s18, 6  }
 0x161   :  { %17 = sbr.rel (!%p15_p3) target bundleno = 2 (0x2), region = 90 }
 0x168   :  { %2128 = vsyncpa [#allocation3], 1 }
 0x169   :  { %2130 = vsyncpa [#allocation3 + $0x1], 1 }
 0x16a   :  { %2131 = vsyncpa [#allocation5], 1 }

</bundles_post_ra>
